<compile_context>
chip_gen: v5e
topology: v5e:2x2
jax: 0.10.0
libtpu: 0.0.40
codegen_flags: <defaults>
</compile_context>

<pallas_src>
import functools
import numpy as np

import jax
import jax.numpy as jnp
from jax import lax
from jax.experimental import pallas as pl
from jax.experimental.pallas import tpu as pltpu

_EPS = 1e-11


def _round_up(x, m):
    return ((x + m - 1) // m) * m


def _fmix32(x):
    """murmur3 fmix32 avalanche mixer on uint32."""
    x = x ^ (x >> jnp.uint32(16))
    x = x * jnp.uint32(0x85EBCA6B)
    x = x ^ (x >> jnp.uint32(13))
    x = x * jnp.uint32(0xC2B2AE35)
    x = x ^ (x >> jnp.uint32(16))
    return x


def _gumbel_softmax_kernel(seed_ref, x_ref, o_ref, *, inv_temp, hard_sample,
                           n_segs, seg_d):
    tr, c = x_ref.shape                      # static block shape
    x = x_ref[...].astype(jnp.float32)

    # ---- uniform u ~ U[0,1) from a stateless per-element counter hash ----
    row_ids = lax.broadcasted_iota(jnp.int32, (tr, c), 0)
    col_ids = lax.broadcasted_iota(jnp.int32, (tr, c), 1)
    row_off = pl.program_id(0) * tr                       # global row offset
    gid = (row_ids + row_off) * c + col_ids               # unique element id
    h = gid.astype(jnp.uint32) ^ (seed_ref[0].astype(jnp.uint32)
                                  + jnp.uint32(0x9E3779B9))
    h = _fmix32(h)
    h = _fmix32(h ^ jnp.uint32(0x68E31DA4))
    # top 24 random bits -> exact float32 in [0, 1)
    u = (h >> jnp.uint32(8)).astype(jnp.int32).astype(jnp.float32) \
        * jnp.float32(1.0 / 16777216.0)
    g = -jnp.log(-jnp.log(u + jnp.float32(_EPS)))

    # softmax shift-invariance removes the reference's log_softmax pass.
    y = (x + g) * jnp.float32(inv_temp)

    def seg(a, s):                       # s-th packed-row segment (static slice)
        return a[:, s * seg_d:(s + 1) * seg_d]

    def cat(pieces):
        return pieces[0] if len(pieces) == 1 else jnp.concatenate(pieces, axis=-1)

    if hard_sample:
        # one_hot(argmax(softmax(y))) == one_hot(argmax(y)); skip the softmax.
        lane = lax.broadcasted_iota(jnp.int32, (tr, seg_d), 1)
        pieces = []
        for s in range(n_segs):
            ys = seg(y, s)
            m = jnp.max(ys, axis=-1, keepdims=True)
            # first-max index (argmax semantics; no multi-hot on ties)
            idx = jnp.min(jnp.where(ys == m, lane, seg_d), axis=-1, keepdims=True)
            pieces.append((lane == idx).astype(jnp.float32))
        out = cat(pieces)
    else:
        # segmented max -> broadcast back lane-dense, exp once over full lanes
        maxes = [jnp.max(seg(y, s), axis=-1, keepdims=True) for s in range(n_segs)]
        m_full = cat([jnp.broadcast_to(m, (tr, seg_d)) for m in maxes])
        e = jnp.exp(y - m_full)                           # lane-dense EUP work
        sums = [jnp.sum(seg(e, s), axis=-1, keepdims=True) for s in range(n_segs)]
        s_full = cat([jnp.broadcast_to(sv, (tr, seg_d)) for sv in sums])
        # TODO(synk): pl.reciprocal(s_full, approx=True) is a further EUP win on
        # real TPUs but is kept as a plain divide for interpret-mode portability.
        out = e / s_full

    o_ref[...] = out.astype(o_ref.dtype)


def gumbel_softmax(logits, temperature=1.0, hard_sample=False, seed=0):
    """JAX/Pallas forward-pass equivalent of GumbelSoftmax.forward."""
    orig_shape = logits.shape
    D = int(orig_shape[-1])
    rows = int(np.prod(orig_shape[:-1])) if len(orig_shape) > 1 else 1

    # Lane-dense packing: fold G = 128 // D rows into one 128-wide lane row.
    if D < 128 and 128 % D == 0 and rows % (128 // D) == 0:
        G = 128 // D
    else:
        G = 1
    R, C = rows // G, G * D
    x2 = logits.reshape(R, C)          # free: row-major contiguous view

    # Row tile: ~1 MiB of lane-padded data per tile, sublane-aligned rows.
    sub = max(8, 32 // jnp.dtype(logits.dtype).itemsize)
    padded_c = _round_up(C, 128)
    tr = (1 << 20) // (padded_c * 4)
    tr = max(sub, (tr // sub) * sub)
    tr = min(tr, _round_up(R, sub))
    grid = (pl.cdiv(R, tr),)           # ragged tail -> masked edge block

    seed_arr = jnp.asarray([seed], dtype=jnp.int32)
    kernel = functools.partial(
        _gumbel_softmax_kernel,
        inv_temp=1.0 / float(temperature),
        hard_sample=bool(hard_sample),
        n_segs=G,
        seg_d=D,
    )

    out2 = pl.pallas_call(
        kernel,
        out_shape=jax.ShapeDtypeStruct((R, C), logits.dtype),
        grid=grid,
        in_specs=[
            pl.BlockSpec(memory_space=pltpu.MemorySpace.SMEM),   # seed scalar
            pl.BlockSpec((tr, C), lambda i: (i, 0)),             # logits tile
        ],
        out_specs=pl.BlockSpec((tr, C), lambda i: (i, 0)),
        compiler_params=pltpu.CompilerParams(
            dimension_semantics=("parallel",),   # grid steps independent (v7x 2 TCs)
            vmem_limit_bytes=32 * 1024 * 1024,
        ),
    )(seed_arr, x2)

    return out2.reshape(orig_shape)


if __name__ == "__main__":
    key = jax.random.PRNGKey(0)
    # Small logits tensor; softmax runs over the last axis (size 16).
    logits = jax.random.normal(key, (2, 4, 16, 16), dtype=jnp.float32)

    # Soft sample (default forward path).
    y_soft = gumbel_softmax(logits, temperature=1.0, hard_sample=False, seed=42)
    y_soft = jax.block_until_ready(y_soft)
    assert y_soft.shape == logits.shape
    row_sums = jnp.sum(y_soft, axis=-1)
    assert bool(jnp.allclose(row_sums, 1.0, atol=1e-3))
    assert bool(jnp.all(y_soft >= 0.0))

    # Hard sample path (forward value is a one-hot along the last axis).
    y_hard = gumbel_softmax(logits, temperature=0.5, hard_sample=True, seed=7)
    y_hard = jax.block_until_ready(y_hard)
    assert y_hard.shape == logits.shape
    assert bool(jnp.allclose(jnp.sum(y_hard, axis=-1), 1.0))
    assert bool(jnp.all((y_hard == 0.0) | (y_hard == 1.0)))

    print("KERNEL_OK")
</pallas_src>

<mosaic_0001>
module attributes {stable_mosaic.version = 11 : i64} {
  func.func @_gumbel_softmax_kernel(%arg0: i32, %arg1: memref<1xi32, #tpu.memory_space<smem>>, %arg2: memref<16x128xf32, #tpu.memory_space<vmem>>, %arg3: memref<16x128xf32, #tpu.memory_space<vmem>>) attributes {dimension_semantics = [#tpu.dimension_semantics<parallel>], iteration_bounds = array<i64: 1>, scalar_prefetch = 0 : i64, scratch_operands = 0 : i64, tpu.core_type = #tpu.core_type<tc>, window_params = [{transform_indices = @transform_0, window_bounds = array<i64: 1>}, {transform_indices = @transform_1, window_bounds = array<i64: 16, 128>}, {transform_indices = @transform_2, window_bounds = array<i64: 16, 128>}]} {
    %c0 = arith.constant 0 : index
    %c0_0 = arith.constant 0 : index
    %0 = vector.load %arg2[%c0, %c0_0] : memref<16x128xf32, #tpu.memory_space<vmem>>, vector<16x128xf32>
    %1 = tpu.iota {dimensions = array<i32: 0>} : vector<16x128xi32>
    %2 = tpu.iota {dimensions = array<i32: 1>} : vector<16x128xi32>
    %c16_i32 = arith.constant 16 : i32
    %3 = arith.muli %arg0, %c16_i32 : i32
    %4 = vector.broadcast %3 : i32 to vector<16x128xi32>
    %5 = arith.addi %1, %4 : vector<16x128xi32>
    %c128_i32 = arith.constant 128 : i32
    %6 = vector.broadcast %c128_i32 : i32 to vector<16x128xi32>
    %7 = arith.muli %5, %6 : vector<16x128xi32>
    %8 = arith.addi %7, %2 : vector<16x128xi32>
    %c0_1 = arith.constant 0 : index
    %9 = memref.load %arg1[%c0_1] : memref<1xi32, #tpu.memory_space<smem>>
    %c-1640531527_i32 = arith.constant -1640531527 : i32
    %10 = arith.addi %9, %c-1640531527_i32 : i32
    %11 = vector.broadcast %10 : i32 to vector<16x128xi32>
    %12 = arith.xori %8, %11 : vector<16x128xi32>
    %c16_i32_2 = arith.constant 16 : i32
    %13 = vector.broadcast %c16_i32_2 : i32 to vector<16x128xi32>
    %14 = arith.shrui %12, %13 : vector<16x128xi32>
    %15 = arith.xori %12, %14 : vector<16x128xi32>
    %c-2048144789_i32 = arith.constant -2048144789 : i32
    %16 = vector.broadcast %c-2048144789_i32 : i32 to vector<16x128xi32>
    %17 = arith.muli %15, %16 : vector<16x128xi32>
    %c13_i32 = arith.constant 13 : i32
    %18 = vector.broadcast %c13_i32 : i32 to vector<16x128xi32>
    %19 = arith.shrui %17, %18 : vector<16x128xi32>
    %20 = arith.xori %17, %19 : vector<16x128xi32>
    %c-1028477387_i32 = arith.constant -1028477387 : i32
    %21 = vector.broadcast %c-1028477387_i32 : i32 to vector<16x128xi32>
    %22 = arith.muli %20, %21 : vector<16x128xi32>
    %c16_i32_3 = arith.constant 16 : i32
    %23 = vector.broadcast %c16_i32_3 : i32 to vector<16x128xi32>
    %24 = arith.shrui %22, %23 : vector<16x128xi32>
    %25 = arith.xori %22, %24 : vector<16x128xi32>
    %c1759714724_i32 = arith.constant 1759714724 : i32
    %26 = vector.broadcast %c1759714724_i32 : i32 to vector<16x128xi32>
    %27 = arith.xori %25, %26 : vector<16x128xi32>
    %c16_i32_4 = arith.constant 16 : i32
    %28 = vector.broadcast %c16_i32_4 : i32 to vector<16x128xi32>
    %29 = arith.shrui %27, %28 : vector<16x128xi32>
    %30 = arith.xori %27, %29 : vector<16x128xi32>
    %c-2048144789_i32_5 = arith.constant -2048144789 : i32
    %31 = vector.broadcast %c-2048144789_i32_5 : i32 to vector<16x128xi32>
    %32 = arith.muli %30, %31 : vector<16x128xi32>
    %c13_i32_6 = arith.constant 13 : i32
    %33 = vector.broadcast %c13_i32_6 : i32 to vector<16x128xi32>
    %34 = arith.shrui %32, %33 : vector<16x128xi32>
    %35 = arith.xori %32, %34 : vector<16x128xi32>
    %c-1028477387_i32_7 = arith.constant -1028477387 : i32
    %36 = vector.broadcast %c-1028477387_i32_7 : i32 to vector<16x128xi32>
    %37 = arith.muli %35, %36 : vector<16x128xi32>
    %c16_i32_8 = arith.constant 16 : i32
    %38 = vector.broadcast %c16_i32_8 : i32 to vector<16x128xi32>
    %39 = arith.shrui %37, %38 : vector<16x128xi32>
    %40 = arith.xori %37, %39 : vector<16x128xi32>
    %c8_i32 = arith.constant 8 : i32
    %41 = vector.broadcast %c8_i32 : i32 to vector<16x128xi32>
    %42 = arith.shrui %40, %41 : vector<16x128xi32>
    %43 = arith.sitofp %42 : vector<16x128xi32> to vector<16x128xf32>
    %cst = arith.constant 5.96046448E-8 : f32
    %44 = vector.broadcast %cst : f32 to vector<16x128xf32>
    %45 = arith.mulf %43, %44 : vector<16x128xf32>
    %cst_9 = arith.constant 9.99999996E-12 : f32
    %46 = vector.broadcast %cst_9 : f32 to vector<16x128xf32>
    %47 = arith.addf %45, %46 : vector<16x128xf32>
    %48 = math.log %47 : vector<16x128xf32>
    %cst_10 = arith.constant 0.000000e+00 : f32
    %49 = vector.broadcast %cst_10 : f32 to vector<16x128xf32>
    %50 = arith.subf %49, %48 : vector<16x128xf32>
    %51 = math.log %50 : vector<16x128xf32>
    %cst_11 = arith.constant 0.000000e+00 : f32
    %52 = vector.broadcast %cst_11 : f32 to vector<16x128xf32>
    %53 = arith.subf %52, %51 : vector<16x128xf32>
    %54 = arith.addf %0, %53 : vector<16x128xf32>
    %cst_12 = arith.constant 1.000000e+00 : f32
    %55 = vector.broadcast %cst_12 : f32 to vector<16x128xf32>
    %56 = arith.mulf %54, %55 : vector<16x128xf32>
    %57 = vector.extract_strided_slice %56 {offsets = [0, 0], sizes = [16, 16], strides = [1, 1]} : vector<16x128xf32> to vector<16x16xf32>
    %cst_13 = arith.constant dense<0xFF800000> : vector<16xf32>
    %58 = vector.multi_reduction <maximumf>, %57, %cst_13 [1] : vector<16x16xf32> to vector<16xf32>
    %59 = vector.shape_cast %58 : vector<16xf32> to vector<16x1xf32>
    %60 = vector.extract_strided_slice %56 {offsets = [0, 16], sizes = [16, 16], strides = [1, 1]} : vector<16x128xf32> to vector<16x16xf32>
    %cst_14 = arith.constant dense<0xFF800000> : vector<16xf32>
    %61 = vector.multi_reduction <maximumf>, %60, %cst_14 [1] : vector<16x16xf32> to vector<16xf32>
    %62 = vector.shape_cast %61 : vector<16xf32> to vector<16x1xf32>
    %63 = vector.extract_strided_slice %56 {offsets = [0, 32], sizes = [16, 16], strides = [1, 1]} : vector<16x128xf32> to vector<16x16xf32>
    %cst_15 = arith.constant dense<0xFF800000> : vector<16xf32>
    %64 = vector.multi_reduction <maximumf>, %63, %cst_15 [1] : vector<16x16xf32> to vector<16xf32>
    %65 = vector.shape_cast %64 : vector<16xf32> to vector<16x1xf32>
    %66 = vector.extract_strided_slice %56 {offsets = [0, 48], sizes = [16, 16], strides = [1, 1]} : vector<16x128xf32> to vector<16x16xf32>
    %cst_16 = arith.constant dense<0xFF800000> : vector<16xf32>
    %67 = vector.multi_reduction <maximumf>, %66, %cst_16 [1] : vector<16x16xf32> to vector<16xf32>
    %68 = vector.shape_cast %67 : vector<16xf32> to vector<16x1xf32>
    %69 = vector.extract_strided_slice %56 {offsets = [0, 64], sizes = [16, 16], strides = [1, 1]} : vector<16x128xf32> to vector<16x16xf32>
    %cst_17 = arith.constant dense<0xFF800000> : vector<16xf32>
    %70 = vector.multi_reduction <maximumf>, %69, %cst_17 [1] : vector<16x16xf32> to vector<16xf32>
    %71 = vector.shape_cast %70 : vector<16xf32> to vector<16x1xf32>
    %72 = vector.extract_strided_slice %56 {offsets = [0, 80], sizes = [16, 16], strides = [1, 1]} : vector<16x128xf32> to vector<16x16xf32>
    %cst_18 = arith.constant dense<0xFF800000> : vector<16xf32>
    %73 = vector.multi_reduction <maximumf>, %72, %cst_18 [1] : vector<16x16xf32> to vector<16xf32>
    %74 = vector.shape_cast %73 : vector<16xf32> to vector<16x1xf32>
    %75 = vector.extract_strided_slice %56 {offsets = [0, 96], sizes = [16, 16], strides = [1, 1]} : vector<16x128xf32> to vector<16x16xf32>
    %cst_19 = arith.constant dense<0xFF800000> : vector<16xf32>
    %76 = vector.multi_reduction <maximumf>, %75, %cst_19 [1] : vector<16x16xf32> to vector<16xf32>
    %77 = vector.shape_cast %76 : vector<16xf32> to vector<16x1xf32>
    %78 = vector.extract_strided_slice %56 {offsets = [0, 112], sizes = [16, 16], strides = [1, 1]} : vector<16x128xf32> to vector<16x16xf32>
    %cst_20 = arith.constant dense<0xFF800000> : vector<16xf32>
    %79 = vector.multi_reduction <maximumf>, %78, %cst_20 [1] : vector<16x16xf32> to vector<16xf32>
    %80 = vector.shape_cast %79 : vector<16xf32> to vector<16x1xf32>
    %81 = vector.shape_cast %59 : vector<16x1xf32> to vector<16x1xf32>
    %82 = vector.broadcast %81 : vector<16x1xf32> to vector<16x16xf32>
    %83 = vector.shape_cast %62 : vector<16x1xf32> to vector<16x1xf32>
    %84 = vector.broadcast %83 : vector<16x1xf32> to vector<16x16xf32>
    %85 = vector.shape_cast %65 : vector<16x1xf32> to vector<16x1xf32>
    %86 = vector.broadcast %85 : vector<16x1xf32> to vector<16x16xf32>
    %87 = vector.shape_cast %68 : vector<16x1xf32> to vector<16x1xf32>
    %88 = vector.broadcast %87 : vector<16x1xf32> to vector<16x16xf32>
    %89 = vector.shape_cast %71 : vector<16x1xf32> to vector<16x1xf32>
    %90 = vector.broadcast %89 : vector<16x1xf32> to vector<16x16xf32>
    %91 = vector.shape_cast %74 : vector<16x1xf32> to vector<16x1xf32>
    %92 = vector.broadcast %91 : vector<16x1xf32> to vector<16x16xf32>
    %93 = vector.shape_cast %77 : vector<16x1xf32> to vector<16x1xf32>
    %94 = vector.broadcast %93 : vector<16x1xf32> to vector<16x16xf32>
    %95 = vector.shape_cast %80 : vector<16x1xf32> to vector<16x1xf32>
    %96 = vector.broadcast %95 : vector<16x1xf32> to vector<16x16xf32>
    %97 = tpu.concatenate %82, %84, %86, %88, %90, %92, %94, %96 in 1 : vector<16x16xf32>, vector<16x16xf32>, vector<16x16xf32>, vector<16x16xf32>, vector<16x16xf32>, vector<16x16xf32>, vector<16x16xf32>, vector<16x16xf32> -> vector<16x128xf32>
    %98 = arith.subf %56, %97 : vector<16x128xf32>
    %99 = math.exp %98 : vector<16x128xf32>
    %100 = vector.extract_strided_slice %99 {offsets = [0, 0], sizes = [16, 16], strides = [1, 1]} : vector<16x128xf32> to vector<16x16xf32>
    %cst_21 = arith.constant dense<0.000000e+00> : vector<16xf32>
    %101 = vector.multi_reduction <add>, %100, %cst_21 [1] : vector<16x16xf32> to vector<16xf32>
    %102 = vector.shape_cast %101 : vector<16xf32> to vector<16x1xf32>
    %103 = vector.extract_strided_slice %99 {offsets = [0, 16], sizes = [16, 16], strides = [1, 1]} : vector<16x128xf32> to vector<16x16xf32>
    %cst_22 = arith.constant dense<0.000000e+00> : vector<16xf32>
    %104 = vector.multi_reduction <add>, %103, %cst_22 [1] : vector<16x16xf32> to vector<16xf32>
    %105 = vector.shape_cast %104 : vector<16xf32> to vector<16x1xf32>
    %106 = vector.extract_strided_slice %99 {offsets = [0, 32], sizes = [16, 16], strides = [1, 1]} : vector<16x128xf32> to vector<16x16xf32>
    %cst_23 = arith.constant dense<0.000000e+00> : vector<16xf32>
    %107 = vector.multi_reduction <add>, %106, %cst_23 [1] : vector<16x16xf32> to vector<16xf32>
    %108 = vector.shape_cast %107 : vector<16xf32> to vector<16x1xf32>
    %109 = vector.extract_strided_slice %99 {offsets = [0, 48], sizes = [16, 16], strides = [1, 1]} : vector<16x128xf32> to vector<16x16xf32>
    %cst_24 = arith.constant dense<0.000000e+00> : vector<16xf32>
    %110 = vector.multi_reduction <add>, %109, %cst_24 [1] : vector<16x16xf32> to vector<16xf32>
    %111 = vector.shape_cast %110 : vector<16xf32> to vector<16x1xf32>
    %112 = vector.extract_strided_slice %99 {offsets = [0, 64], sizes = [16, 16], strides = [1, 1]} : vector<16x128xf32> to vector<16x16xf32>
    %cst_25 = arith.constant dense<0.000000e+00> : vector<16xf32>
    %113 = vector.multi_reduction <add>, %112, %cst_25 [1] : vector<16x16xf32> to vector<16xf32>
    %114 = vector.shape_cast %113 : vector<16xf32> to vector<16x1xf32>
    %115 = vector.extract_strided_slice %99 {offsets = [0, 80], sizes = [16, 16], strides = [1, 1]} : vector<16x128xf32> to vector<16x16xf32>
    %cst_26 = arith.constant dense<0.000000e+00> : vector<16xf32>
    %116 = vector.multi_reduction <add>, %115, %cst_26 [1] : vector<16x16xf32> to vector<16xf32>
    %117 = vector.shape_cast %116 : vector<16xf32> to vector<16x1xf32>
    %118 = vector.extract_strided_slice %99 {offsets = [0, 96], sizes = [16, 16], strides = [1, 1]} : vector<16x128xf32> to vector<16x16xf32>
    %cst_27 = arith.constant dense<0.000000e+00> : vector<16xf32>
    %119 = vector.multi_reduction <add>, %118, %cst_27 [1] : vector<16x16xf32> to vector<16xf32>
    %120 = vector.shape_cast %119 : vector<16xf32> to vector<16x1xf32>
    %121 = vector.extract_strided_slice %99 {offsets = [0, 112], sizes = [16, 16], strides = [1, 1]} : vector<16x128xf32> to vector<16x16xf32>
    %cst_28 = arith.constant dense<0.000000e+00> : vector<16xf32>
    %122 = vector.multi_reduction <add>, %121, %cst_28 [1] : vector<16x16xf32> to vector<16xf32>
    %123 = vector.shape_cast %122 : vector<16xf32> to vector<16x1xf32>
    %124 = vector.shape_cast %102 : vector<16x1xf32> to vector<16x1xf32>
    %125 = vector.broadcast %124 : vector<16x1xf32> to vector<16x16xf32>
    %126 = vector.shape_cast %105 : vector<16x1xf32> to vector<16x1xf32>
    %127 = vector.broadcast %126 : vector<16x1xf32> to vector<16x16xf32>
    %128 = vector.shape_cast %108 : vector<16x1xf32> to vector<16x1xf32>
    %129 = vector.broadcast %128 : vector<16x1xf32> to vector<16x16xf32>
    %130 = vector.shape_cast %111 : vector<16x1xf32> to vector<16x1xf32>
    %131 = vector.broadcast %130 : vector<16x1xf32> to vector<16x16xf32>
    %132 = vector.shape_cast %114 : vector<16x1xf32> to vector<16x1xf32>
    %133 = vector.broadcast %132 : vector<16x1xf32> to vector<16x16xf32>
    %134 = vector.shape_cast %117 : vector<16x1xf32> to vector<16x1xf32>
    %135 = vector.broadcast %134 : vector<16x1xf32> to vector<16x16xf32>
    %136 = vector.shape_cast %120 : vector<16x1xf32> to vector<16x1xf32>
    %137 = vector.broadcast %136 : vector<16x1xf32> to vector<16x16xf32>
    %138 = vector.shape_cast %123 : vector<16x1xf32> to vector<16x1xf32>
    %139 = vector.broadcast %138 : vector<16x1xf32> to vector<16x16xf32>
    %140 = tpu.concatenate %125, %127, %129, %131, %133, %135, %137, %139 in 1 : vector<16x16xf32>, vector<16x16xf32>, vector<16x16xf32>, vector<16x16xf32>, vector<16x16xf32>, vector<16x16xf32>, vector<16x16xf32>, vector<16x16xf32> -> vector<16x128xf32>
    %141 = arith.divf %99, %140 : vector<16x128xf32>
    %c0_29 = arith.constant 0 : index
    %c0_30 = arith.constant 0 : index
    %142 = vector.load %arg3[%c0_29, %c0_30] : memref<16x128xf32, #tpu.memory_space<vmem>>, vector<16x128xf32>
    tpu.vector_store %arg3[%c0_29, %c0_30], %141 {strides = array<i32>} : memref<16x128xf32, #tpu.memory_space<vmem>>, vector<16x128xf32>,
    return
  }
  func.func @transform_0(%arg0: i32) -> i32 {
    %c0_i32 = arith.constant 0 : i32
    %c0_i32_0 = arith.constant 0 : i32
    return %c0_i32 : i32
  }
  func.func @transform_1(%arg0: i32) -> (i32, i32) {
    %c0_i32 = arith.constant 0 : i32
    %c0_i32_0 = arith.constant 0 : i32
    return %arg0, %c0_i32 : i32, i32
  }
  func.func @transform_2(%arg0: i32) -> (i32, i32) {
    %c0_i32 = arith.constant 0 : i32
    %c0_i32_0 = arith.constant 0 : i32
    return %arg0, %c0_i32 : i32, i32
  }
}

</mosaic_0001>

<bundles_post_ra>
// kernel: tpu_custom_call.1
= control target key start
LH: loop header
LB: loop body
LE: loop exit
PB: predicated region body
PF: predicated region fallthrough
CT: control target
= control target key end

     0   :  { %8 = vsyncpa [#allocation4], 0  ;;  %s568_s0 = inlined_call_operand.<no memory space> [shape: s32[1], index: 0, kind: input, shape index: {}]   ;;  %s569_s1 = inlined_call_operand.hbm [shape: f32[16,128], index: 1, kind: input, shape index: {}]   ;;  %s570_s2 = inlined_call_operand.hbm [shape: f32[16,128], index: 2, kind: output, shape index: {}]  }
   0x1   :  { %9 = vsyncpa [#allocation5], 0  ;;  %s16_s11 = sshll.u32 %s569_s1, 4  ;;  %s423_s12 = smov [#allocation3]   ;;  %s17_s11 = int_to_ptr.hbm [resolvable:$true] %s16_s11 }
   0x2   :  { %s18_s13 = sshll.u32 %s423_s12, 4  ;;  %s424_s14 = smov 128   ;;  %s19_s13 = int_to_ptr.vmem [resolvable:$true] %s18_s13 }
   0x3   :  { %s425_s15 = smov 8  }
   0x4   :  { %24 = dma.hbm_to_vmem [thread:$0]  %s17_s11, 256, %s19_s13, [#allocation4], %s424_s14, %s424_s14, %s425_s15  }
   0x5   :  { %419 = dma.done.wait [#allocation4], 256  }
   0x6   :  { %420 = vsyncadd [#allocation4], 4294967040  ;;  %v31_v0 = vlaneseq  ;;  %s45_s18 = sadd.s32 2654435769, %s568_s0  ;;  %v29_v61 = vld [vmem:[#allocation3] sm:$0xff]  ;;  %vm112_vm0 = vcmask 261248  }
   0x7   :  { %v46_v5 = vstv %s45_s18  ;;  %vm105_vm1 = vcmask 130048   ;;  %vm119_vm2 = vcmask 392448   ;;  %vm126_vm3 = vcmask 523648   ;;  %s426_s0 = smov 96   ;;  %s427_s1 = smov 112  }
   0x8   :  { %v32_v1 = vshrl.u32 %v31_v0, 7  ;;  %v35_v2 = vand.u32 127, %v31_v0  ;;  %vm140_vm4 = vcmask 786048   ;;  %vm133_vm5 = vcmask 654848   ;;  %s428_s19 = smov 80   ;;  %s429_s20 = smov 64  }
   0x9   :  { %vm147_vm6 = vcmask 917248   ;;  %vm154_vm7 = vcmask 1048448   ;;  %vm163_vm8 = vcmask 261120   ;;  %vm166_vm9 = vcmask 392192   ;;  %s430_s21 = smov 48   ;;  %s431_s22 = smov 32  }
   0xa   :  { %v40_v3 = vmul.u32 128, %v32_v1  ;;  %v33_v4 = vadd.s32 8, %v32_v1  ;;  %vm169_vm10 = vcmask 523264   ;;  %vm172_vm11 = vcmask 654336   ;;  %s432_s23 = smov 16   ;;  %s433_s24 = smov [#allocation6]  }
   0xb   :  { %vm175_vm12 = vcmask 785408   ;;  %vm178_vm13 = vcmask 916480   ;;  %s329_s25 = sshll.u32 %s433_s24, 4  ;;  %s331_s28 = sshll.u32 %s570_s2, 4  ;;  %s330_s25 = int_to_ptr.vmem [resolvable:$true] %s329_s25  ;;  %s332_s28 = int_to_ptr.hbm [resolvable:$true] %s331_s28 }
   0xc   :  { %v42_v6 = vadd.s32 %v40_v3, %v35_v2  ;;  %v41_v7 = vmul.u32 128, %v33_v4 }
   0xe   :  { %v47_v8 = vxor.u32 %v46_v5, %v42_v6  ;;  %v43_v9 = vadd.s32 %v41_v7, %v35_v2 }
  0x10   :  { %v49_v10 = vshrl.u32 %v47_v8, 16  ;;  %v48_v11 = vxor.u32 %v46_v5, %v43_v9  ;;  %v30_v9 = vld [vmem:[#allocation3 + $0x8] sm:$0xff] }
  0x12   :  { %v51_v12 = vxor.u32 %v49_v10, %v47_v8  ;;  %v50_v13 = vshrl.u32 %v48_v11, 16 }
  0x14   :  { %v53_v14 = vmul.u32 2246822507, %v51_v12  ;;  %v52_v15 = vxor.u32 %v50_v13, %v48_v11 }
  0x16   :  { %v55_v16 = vshrl.u32 %v53_v14, 13  ;;  %v54_v17 = vmul.u32 2246822507, %v52_v15 }
  0x18   :  { %v57_v18 = vxor.u32 %v55_v16, %v53_v14  ;;  %v56_v19 = vshrl.u32 %v54_v17, 13 }
  0x1a   :  { %v59_v20 = vmul.u32 3266489909, %v57_v18  ;;  %v58_v21 = vxor.u32 %v56_v19, %v54_v17 }
  0x1c   :  { %v61_v22 = vshrl.u32 %v59_v20, 16  ;;  %v60_v23 = vmul.u32 3266489909, %v58_v21 }
  0x1e   :  { %v63_v24 = vxor.u32 %v61_v22, %v59_v20  ;;  %v62_v25 = vshrl.u32 %v60_v23, 16 }
  0x20   :  { %v65_v26 = vxor.u32 1759714724, %v63_v24  ;;  %v64_v27 = vxor.u32 %v62_v25, %v60_v23 }
  0x22   :  { %v67_v28 = vshrl.u32 %v65_v26, 16  ;;  %v66_v29 = vxor.u32 1759714724, %v64_v27 }
  0x24   :  { %v69_v30 = vxor.u32 %v67_v28, %v65_v26  ;;  %v68_v31 = vshrl.u32 %v66_v29, 16 }
  0x26   :  { %v71_v32 = vmul.u32 2246822507, %v69_v30  ;;  %v70_v33 = vxor.u32 %v68_v31, %v66_v29 }
  0x28   :  { %v73_v34 = vshrl.u32 %v71_v32, 13  ;;  %v72_v35 = vmul.u32 2246822507, %v70_v33 }
  0x2a   :  { %v75_v36 = vxor.u32 %v73_v34, %v71_v32  ;;  %v74_v37 = vshrl.u32 %v72_v35, 13 }
  0x2c   :  { %v77_v38 = vmul.u32 3266489909, %v75_v36  ;;  %v76_v39 = vxor.u32 %v74_v37, %v72_v35 }
  0x2e   :  { %v79_v40 = vshrl.u32 %v77_v38, 16  ;;  %v78_v41 = vmul.u32 3266489909, %v76_v39 }
  0x30   :  { %v81_v42 = vxor.u32 %v79_v40, %v77_v38  ;;  %v80_v43 = vshrl.u32 %v78_v41, 16 }
  0x32   :  { %v83_v44 = vshrl.u32 %v81_v42, 8  ;;  %v82_v45 = vxor.u32 %v80_v43, %v78_v41 }
  0x34   :  { %v85_v46 = vcvt.s32.f32 %v83_v44  ;;  %v84_v47 = vshrl.u32 %v82_v45, 8 }
  0x36   :  { %v87_v48 = vmul.f32 5.9604645e-08, %v85_v46  ;;  %v86_v49 = vcvt.s32.f32 %v84_v47 }
  0x38   :  { %v89_v50 = vadd.f32 1e-11, %v87_v48  ;;  %v88_v51 = vmul.f32 5.9604645e-08, %v86_v49 }
  0x3a   :  { %355 = vlog2.f32 %v89_v50  ;;  %v90_v52 = vadd.f32 1e-11, %v88_v51 }
  0x3c   :  { %357 = vlog2.f32 %v90_v52 }
  0x40   :  { %v356_v53 = vpop.eup %355 }
  0x41   :  { %v92_v54 = vmul.f32 0.6931472, %v356_v53 }
  0x42   :  { %v358_v55 = vpop.eup %357 }
  0x43   :  { %v95_v56 = vsub.f32 0.0, %v92_v54  ;;  %v94_v57 = vmul.f32 0.6931472, %v358_v55 }
  0x45   :  { %359 = vlog2.f32 %v95_v56  ;;  %v96_v58 = vsub.f32 0.0, %v94_v57 }
  0x47   :  { %361 = vlog2.f32 %v96_v58 }
  0x4b   :  { %v360_v59 = vpop.eup %359 }
  0x4c   :  { %v98_v60 = vmul.f32 0.6931472, %v360_v59 }
  0x4d   :  { %v362_v0 = vpop.eup %361 }
  0x4e   :  { %v101_v62 = vsub.f32 0.0, %v98_v60  ;;  %v100_v4 = vmul.f32 0.6931472, %v362_v0 }
  0x50   :  { %v458_v63 = vadd.f32 %v101_v62, %v29_v61  ;;  %v102_v7 = vsub.f32 0.0, %v100_v4 }
  0x52   :  { %v113_v1 = vsel %vm112_vm0, %v458_v63, -inf  ;;  %v106_v2 = vsel %vm105_vm1, %v458_v63, -inf  ;;  %v120_v3 = vsel %vm119_vm2, %v458_v63, -inf  ;;  %v127_v5 = vsel %vm126_vm3, %v458_v63, -inf }
  0x53   :  { %114 = vmax.xlane.f32.xlu1 %v113_v1  ;;  %107 = vmax.xlane.f32.xlu0 %v106_v2  ;;  %v141_v6 = vsel %vm140_vm4, %v458_v63, -inf  ;;  %v134_v8 = vsel %vm133_vm5, %v458_v63, -inf  ;;  %v472_v10 = vadd.f32 %v102_v7, %v30_v9  ;;  %v148_v11 = vsel %vm147_vm6, %v458_v63, -inf }
  0x54   :  { %121 = vmax.xlane.f32.xlu2 %v120_v3  ;;  %v155_v13 = vsel %vm154_vm7, %v458_v63, -inf }
  0x55   :  { %v116_v12 = vsel %vm112_vm0, %v472_v10, -inf  ;;  %v109_v14 = vsel %vm105_vm1, %v472_v10, -inf  ;;  %v130_v15 = vsel %vm126_vm3, %v472_v10, -inf  ;;  %v123_v16 = vsel %vm119_vm2, %v472_v10, -inf }
  0x56   :  { %v137_v17 = vsel %vm133_vm5, %v472_v10, -inf  ;;  %v151_v18 = vsel %vm147_vm6, %v472_v10, -inf  ;;  %v144_v19 = vsel %vm140_vm4, %v472_v10, -inf  ;;  %v158_v20 = vsel %vm154_vm7, %v472_v10, -inf }
  0x5b   :  { %128 = vmax.xlane.f32.xlu0 %v127_v5  ;;  %142 = vmax.xlane.f32.xlu1 %v141_v6 }
  0x5c   :  { %135 = vmax.xlane.f32.xlu2 %v134_v8 }
  0x63   :  { %149 = vmax.xlane.f32.xlu0 %v148_v11  ;;  %117 = vmax.xlane.f32.xlu1 %v116_v12 }
  0x64   :  { %156 = vmax.xlane.f32.xlu2 %v155_v13 }
  0x6b   :  { %110 = vmax.xlane.f32.xlu0 %v109_v14  ;;  %131 = vmax.xlane.f32.xlu1 %v130_v15 }
  0x6c   :  { %124 = vmax.xlane.f32.xlu2 %v123_v16 }
  0x73   :  { %138 = vmax.xlane.f32.xlu0 %v137_v17  ;;  %152 = vmax.xlane.f32.xlu1 %v151_v18 }
  0x74   :  { %145 = vmax.xlane.f32.xlu2 %v144_v19 }
  0x7b   :  { %159 = vmax.xlane.f32.xlu0 %v158_v20 }
  0xc6   :  { %v115_v21 = vpop.xlane.xlu1 %114  ;;  %v108_v22 = vpop.xlane.xlu0 %107 }
  0xc7   :  { %v122_v23 = vpop.xlane.xlu2 %121  ;;  %v161_v24 = vsel %vm105_vm1, %v108_v22, %v115_v21 }
  0xc8   :  { %v164_v27 = vsel %vm163_vm8, %v161_v24, %v122_v23 }
  0xce   :  { %v129_v25 = vpop.xlane.xlu0 %128  ;;  %v143_v26 = vpop.xlane.xlu1 %142 }
  0xcf   :  { %v136_v28 = vpop.xlane.xlu2 %135  ;;  %v167_v29 = vsel %vm166_vm9, %v164_v27, %v129_v25 }
  0xd0   :  { %v170_v30 = vsel %vm169_vm10, %v167_v29, %v136_v28 }
  0xd1   :  { %v173_v31 = vsel %vm172_vm11, %v170_v30, %v143_v26 }
  0xd6   :  { %v150_v32 = vpop.xlane.xlu0 %149  ;;  %v118_v35 = vpop.xlane.xlu1 %117 }
  0xd7   :  { %v176_v33 = vsel %vm175_vm12, %v173_v31, %v150_v32  ;;  %v157_v34 = vpop.xlane.xlu2 %156 }
  0xd8   :  { %v179_v36 = vsel %vm178_vm13, %v176_v33, %v157_v34 }
  0xd9   :  { %v181_v37 = vsub.f32 %v458_v63, %v179_v36 }
  0xdb   :  { %v183_v38 = vmul.f32 1.442695, %v181_v37 }
  0xdd   :  { %363 = vpow2.f32 %v183_v38 }
  0xde   :  { %v111_v39 = vpop.xlane.xlu0 %110  ;;  %v132_v42 = vpop.xlane.xlu1 %131 }
  0xdf   :  { %v125_v40 = vpop.xlane.xlu2 %124  ;;  %v162_v41 = vsel %vm105_vm1, %v111_v39, %v118_v35 }
  0xe0   :  { %v165_v44 = vsel %vm163_vm8, %v162_v41, %v125_v40 }
  0xe1   :  { %v168_v47 = vsel %vm166_vm9, %v165_v44, %v132_v42 }
  0xe3   :  { %v501_v43 = vpop.eup %363 }
  0xe4   :  { %207 = vrot.lane.b32.xlu2 %v501_v43, %s426_s0  ;;  %195 = vrot.lane.b32.xlu0 %v501_v43, %s427_s1  ;;  %v187_v45 = vsel %vm105_vm1, %v501_v43, 0.0 }
  0xe5   :  { %188 = vadd.xlane.f32.xlu1 %v187_v45 }
  0xe6   :  { %v139_v46 = vpop.xlane.xlu0 %138  ;;  %v153_v51 = vpop.xlane.xlu1 %152 }
  0xe7   :  { %v171_v48 = vsel %vm169_vm10, %v168_v47, %v139_v46  ;;  %v146_v49 = vpop.xlane.xlu2 %145 }
  0xe8   :  { %v174_v50 = vsel %vm172_vm11, %v171_v48, %v146_v49 }
  0xe9   :  { %v177_v52 = vsel %vm175_vm12, %v174_v50, %v153_v51 }
  0xec   :  { %219 = vrot.lane.b32.xlu2 %v501_v43, %s428_s19  ;;  %231 = vrot.lane.b32.xlu0 %v501_v43, %s429_s20 }
  0xee   :  { %v160_v53 = vpop.xlane.xlu0 %159 }
  0xef   :  { %v180_v54 = vsel %vm178_vm13, %v177_v52, %v160_v53 }
  0xf0   :  { %v182_v55 = vsub.f32 %v472_v10, %v180_v54 }
  0xf2   :  { %v185_v56 = vmul.f32 1.442695, %v182_v55 }
  0xf4   :  { %365 = vpow2.f32 %v185_v56  ;;  %243 = vrot.lane.b32.xlu0 %v501_v43, %s430_s21 }
  0xfa   :  { %v518_v57 = vpop.eup %365 }
  0xfb   :  { %221 = vrot.lane.b32.xlu2 %v518_v57, %s428_s19  ;;  %v190_v58 = vsel %vm105_vm1, %v518_v57, 0.0 }
  0xfc   :  { %255 = vrot.lane.b32.xlu0 %v501_v43, %s431_s22 }
  0xfe   :  { %197 = vrot.lane.b32.xlu1 %v518_v57, %s427_s1 }
 0x103   :  { %245 = vrot.lane.b32.xlu2 %v518_v57, %s430_s21 }
 0x104   :  { %209 = vrot.lane.b32.xlu0 %v518_v57, %s426_s0 }
 0x106   :  { %233 = vrot.lane.b32.xlu1 %v518_v57, %s429_s20 }
 0x10c   :  { %267 = vrot.lane.b32.xlu0 %v501_v43, %s432_s23 }
 0x10e   :  { %257 = vrot.lane.b32.xlu1 %v518_v57, %s431_s22 }
 0x116   :  { %269 = vrot.lane.b32.xlu1 %v518_v57, %s432_s23 }
 0x12c   :  { %191 = vadd.xlane.f32.xlu2 %v190_v58 }
 0x13e   :  { %v208_v59 = vpop.permute.xlu2 %207 }
 0x13f   :  { %v213_v60 = vsel %vm105_vm1, %v208_v59, 0.0 }
 0x140   :  { %214 = vadd.xlane.f32.xlu1 %v213_v60 }
 0x146   :  { %v220_v63 = vpop.permute.xlu2 %219 }
 0x147   :  { %v225_v1 = vsel %vm105_vm1, %v220_v63, 0.0 }
 0x155   :  { %v222_v10 = vpop.permute.xlu2 %221 }
 0x156   :  { %v196_v61 = vpop.permute.xlu0 %195  ;;  %v228_v12 = vsel %vm105_vm1, %v222_v10, 0.0 }
 0x157   :  { %v201_v62 = vsel %vm105_vm1, %v196_v61, 0.0 }
 0x158   :  { %202 = vadd.xlane.f32.xlu2 %v201_v62  ;;  %v189_v5 = vpop.xlane.xlu1 %188 }
 0x15d   :  { %v246_v15 = vpop.permute.xlu2 %245 }
 0x15e   :  { %v232_v0 = vpop.permute.xlu0 %231  ;;  %v252_v17 = vsel %vm105_vm1, %v246_v15, 0.0 }
 0x15f   :  { %v237_v2 = vsel %vm105_vm1, %v232_v0, 0.0 }
 0x160   :  { %226 = vadd.xlane.f32.xlu2 %v225_v1  ;;  %238 = vadd.xlane.f32.xlu0 %v237_v2 }
 0x166   :  { %v244_v3 = vpop.permute.xlu0 %243 }
 0x167   :  { %v249_v4 = vsel %vm105_vm1, %v244_v3, 0.0 }
 0x168   :  { %250 = vadd.xlane.f32.xlu2 %v249_v4 }
 0x16e   :  { %v256_v6 = vpop.permute.xlu0 %255 }
 0x16f   :  { %v261_v7 = vsel %vm105_vm1, %v256_v6, 0.0 }
 0x170   :  { %v198_v8 = vpop.permute.xlu1 %197  ;;  %262 = vadd.xlane.f32.xlu1 %v261_v7 }
 0x171   :  { %v204_v9 = vsel %vm105_vm1, %v198_v8, 0.0 }
 0x172   :  { %205 = vadd.xlane.f32.xlu2 %v204_v9 }
 0x176   :  { %v210_v11 = vpop.permute.xlu0 %209 }
 0x177   :  { %v216_v13 = vsel %vm105_vm1, %v210_v11, 0.0 }
 0x178   :  { %v234_v14 = vpop.permute.xlu1 %233  ;;  %229 = vadd.xlane.f32.xlu1 %v228_v12  ;;  %217 = vadd.xlane.f32.xlu0 %v216_v13 }
 0x179   :  { %v240_v16 = vsel %vm105_vm1, %v234_v14, 0.0 }
 0x17e   :  { %v268_v20 = vpop.permute.xlu0 %267 }
 0x17f   :  { %v273_v21 = vsel %vm105_vm1, %v268_v20, 0.0 }
 0x180   :  { %v258_v18 = vpop.permute.xlu1 %257  ;;  %241 = vadd.xlane.f32.xlu1 %v240_v16  ;;  %253 = vadd.xlane.f32.xlu0 %v252_v17 }
 0x181   :  { %v264_v19 = vsel %vm105_vm1, %v258_v18, 0.0 }
 0x182   :  { %265 = vadd.xlane.f32.xlu2 %v264_v19 }
 0x188   :  { %v270_v22 = vpop.permute.xlu1 %269  ;;  %274 = vadd.xlane.f32.xlu0 %v273_v21 }
 0x189   :  { %v276_v23 = vsel %vm105_vm1, %v270_v22, 0.0 }
 0x18a   :  { %277 = vadd.xlane.f32.xlu1 %v276_v23 }
 0x19f   :  { %v192_v24 = vpop.xlane.xlu2 %191 }
 0x1b3   :  { %v215_v26 = vpop.xlane.xlu1 %214 }
 0x1cb   :  { %v203_v25 = vpop.xlane.xlu2 %202 }
 0x1cc   :  { %v279_v34 = vsel %vm105_vm1, %v189_v5, %v203_v25 }
 0x1cd   :  { %v281_v39 = vsel %vm163_vm8, %v279_v34, %v215_v26 }
 0x1d3   :  { %v227_v27 = vpop.xlane.xlu2 %226  ;;  %v239_v28 = vpop.xlane.xlu0 %238 }
 0x1d4   :  { %v283_v40 = vsel %vm166_vm9, %v281_v39, %v227_v27 }
 0x1d5   :  { %v285_v44 = vsel %vm169_vm10, %v283_v40, %v239_v28 }
 0x1db   :  { %v251_v30 = vpop.xlane.xlu2 %250 }
 0x1dc   :  { %v287_v45 = vsel %vm172_vm11, %v285_v44, %v251_v30 }
 0x1e3   :  { %v263_v29 = vpop.xlane.xlu1 %262 }
 0x1e4   :  { %v289_v48 = vsel %vm175_vm12, %v287_v45, %v263_v29 }
 0x1e5   :  { %v206_v33 = vpop.xlane.xlu2 %205 }
 0x1e6   :  { %v280_v35 = vsel %vm105_vm1, %v192_v24, %v206_v33 }
 0x1eb   :  { %v230_v31 = vpop.xlane.xlu1 %229  ;;  %v218_v32 = vpop.xlane.xlu0 %217 }
 0x1ec   :  { %v282_v36 = vsel %vm163_vm8, %v280_v35, %v218_v32 }
 0x1ed   :  { %v284_v41 = vsel %vm166_vm9, %v282_v36, %v230_v31 }
 0x1f3   :  { %v254_v37 = vpop.xlane.xlu0 %253  ;;  %v242_v38 = vpop.xlane.xlu1 %241 }
 0x1f4   :  { %v286_v42 = vsel %vm169_vm10, %v284_v41, %v242_v38 }
 0x1f5   :  { %v288_v46 = vsel %vm172_vm11, %v286_v42, %v254_v37  ;;  %v266_v47 = vpop.xlane.xlu2 %265 }
 0x1f6   :  { %v290_v51 = vsel %vm175_vm12, %v288_v46, %v266_v47 }
 0x1fb   :  { %v275_v49 = vpop.xlane.xlu0 %274 }
 0x1fc   :  { %v291_v50 = vsel %vm178_vm13, %v289_v48, %v275_v49 }
 0x1fd   :  { %367 = vrcp.f32 %v291_v50  ;;  %v278_v52 = vpop.xlane.xlu1 %277  ;;  %v304_v60 = vand.u32 2147483648, %v291_v50  ;;  %v302_v62 = vand.u32 2147483647, %v291_v50  ;;  %vm298_vm15 = vweird.f32 %v291_v50 }
 0x1fe   :  { %v292_v53 = vsel %vm178_vm13, %v290_v51, %v278_v52 }
 0x1ff   :  { %369 = vrcp.f32 %v292_v53  ;;  %v319_v0 = vand.u32 2147483648, %v292_v53  ;;  %v317_v3 = vand.u32 2147483647, %v292_v53  ;;  %v305_v4 = vor.u32 1.1754944e-38, %v304_v60 }
 0x200   :  { %vm303_vm2 = vcmp.eq.f32.partialorder %v302_v62, 8.507059e+37  ;;  %vm313_vm3 = vweird.f32 %v292_v53 }
 0x201   :  { %v320_v7 = vor.u32 1.1754944e-38, %v319_v0  ;;  %vm318_vm5 = vcmp.eq.f32.partialorder %v317_v3, 8.507059e+37 }
 0x203   :  { %v368_v54 = vpop.eup %367 }
 0x204   :  { %v294_v55 = vmul.f32 %v368_v54, %v291_v50  ;;  %vm299_vm14 = vweird.f32 %v368_v54 }
 0x205   :  { %v370_v56 = vpop.eup %369  ;;  %vm300_vm1 = vmor %vm298_vm15, %vm299_vm14 }
 0x206   :  { %v295_v58 = vsub.f32 1.0, %v294_v55  ;;  %v309_v59 = vmul.f32 %v370_v56, %v292_v53  ;;  %vm314_vm0 = vweird.f32 %v370_v56 }
 0x207   :  { %vm315_vm4 = vmor %vm313_vm3, %vm314_vm0 }
 0x208   :  { %v296_v61 = vmul.f32 %v368_v54, %v295_v58  ;;  %v310_v63 = vsub.f32 1.0, %v309_v59 }
 0x20a   :  { %v297_v1 = vadd.f32 %v368_v54, %v296_v61  ;;  %v311_v2 = vmul.f32 %v370_v56, %v310_v63 }
 0x20c   :  { %v312_v5 = vadd.f32 %v370_v56, %v311_v2  ;;  %v301_v6 = vsel %vm300_vm1, %v368_v54, %v297_v1 }
 0x20d   :  { %v306_v8 = vsel %vm303_vm2, %v305_v4, %v301_v6 }
 0x20e   :  { %v307_v9 = vmul.f32 %v501_v43, %v306_v8  ;;  %v316_v10 = vsel %vm315_vm4, %v370_v56, %v312_v5 }
 0x20f   :  { %v321_v11 = vsel %vm318_vm5, %v320_v7, %v316_v10 }
 0x210   :  { %v322_v12 = vmul.f32 %v518_v57, %v321_v11  ;;  %323 = vst [vmem:[#allocation6] sm:$0xff] %v307_v9 }
 0x212   :  { %324 = vst [vmem:[#allocation6 + $0x8] sm:$0xff] %v322_v12 }
 0x213   :  { %337 = dma.vmem_to_hbm [thread:$0]  %s330_s25, 256, %s332_s28, [#allocation5], %s424_s14, %s424_s14, %s425_s15  }
 0x214   :  { %421 = dma.done.wait [#allocation5], 256  }
 0x215   :  { %422 = vsyncadd [#allocation5], 4294967040 }
 0x216   :  { %342 = vsyncpa [#allocation4], 1 }
 0x217   :  { %343 = vsyncpa [#allocation5], 1 }

</bundles_post_ra>
